<compile_context>
chip_gen: v7x
topology: tpu7x:2x2x1
jax: 0.10.0
libtpu: 0.0.40
codegen_flags: <defaults>
</compile_context>

<pallas_src>
import functools

import jax
import jax.numpy as jnp
import numpy as np
from jax.experimental import pallas as pl
from jax.experimental.pallas import tpu as pltpu


def audio_encoder_kernel(x_ref, w1_ref, t1_ref, w2_ref, t2_ref,
                         wp_ref, bp_ref, out_ref, *, valid_l2):
    x = x_ref[...]                                  # (bb, Lpad, 64) bf16
    bb, lpad, cin = x.shape
    l1p = lpad - 2                                  # padded conv1 out length (mult of 16)

    # ---- Conv1d(64 -> 64, k=3) as a single im2col matmul (K = 192) ----
    xi = jnp.concatenate([x[:, k:k + l1p, :] for k in range(3)], axis=-1)
    h = jnp.dot(xi.reshape(bb * l1p, 3 * cin), w1_ref[...],
                preferred_element_type=jnp.float32)            # (bb*l1p, 64) f32

    # ---- BatchNorm1d(64) shift (scale folded into w1) + ReLU ----
    h = jnp.maximum(h + t1_ref[...], 0.0)

    # ---- MaxPool1d(2): pair-split + VPU max, fully in registers ----
    pp = l1p // 2
    h4 = h.reshape(bb, pp, 2, cin)
    pooled = jnp.maximum(h4[:, :, 0, :], h4[:, :, 1, :]).astype(jnp.bfloat16)

    # ---- Conv1d(64 -> 128, k=3) as a single im2col matmul ----
    # Rows past `valid_l2` only see zero-padding garbage and are dropped
    # before the average pool.
    l2p = pp - 2
    pi = jnp.concatenate([pooled[:, k:k + l2p, :] for k in range(3)], axis=-1)
    h2 = jnp.dot(pi.reshape(bb * l2p, 3 * cin), w2_ref[...],
                 preferred_element_type=jnp.float32)           # (bb*l2p, 128) f32

    # ---- BatchNorm1d(128) shift (scale folded into w2) + ReLU ----
    h2 = jnp.maximum(h2 + t2_ref[...], 0.0)

    # ---- AdaptiveAvgPool1d(1): sum over the valid rows (1/L2 folded in wp) ----
    feat = jnp.sum(h2.reshape(bb, l2p, 128)[:, :valid_l2, :], axis=1)  # (bb, 128)

    # ---- Linear(128 -> 128) + ReLU (Dropout(0.2) is identity in eval) ----
    y = jnp.dot(feat.astype(jnp.bfloat16), wp_ref[...],
                preferred_element_type=jnp.float32) + bp_ref[...]
    out_ref[0] = jnp.maximum(y, 0.0)                           # (bb, 128)


def audio_encoder_forward(x_nchw, params):
    """x_nchw: (B, 1, 64, L) float32 -- matches the PyTorch call convention."""
    B = x_nchw.shape[0]
    cin = x_nchw.shape[2]
    L = x_nchw.shape[-1]
    assert L >= 8, "need L >= 8 so the second conv has at least one valid output"
    L1 = L - 2                       # conv1 valid output length
    P = L1 // 2                      # maxpool output length (valid)
    L2 = P - 2                       # conv2 valid output length

    # Sublane-align the conv1 output length (16 = bf16 sublane pack) so the
    # in-kernel (bb, L) <-> (bb*L) merges are free bitcasts.
    L1p = ((L1 + 15) // 16) * 16
    Lpad = L1p + 2

    # Channels-last + bf16 downcast + time zero-padding, one fused XLA pass.
    # TODO(synk): have the producer emit (B, L, 64) bf16 directly and drop this.
    x_blc = jnp.transpose(x_nchw[:, 0], (0, 2, 1)).astype(jnp.bfloat16)
    x_blc = jnp.pad(x_blc, ((0, 0), (0, Lpad - L), (0, 0)))

    eps = 1e-5
    # Fold conv bias + eval-mode BatchNorm into the conv weights (scale) and a
    # per-channel shift (the only BN work left inside the kernel).
    s1 = params['bn1_gamma'] / jnp.sqrt(params['bn1_var'] + eps)
    t1 = (params['conv1_b'] - params['bn1_mean']) * s1 + params['bn1_beta']
    s2 = params['bn2_gamma'] / jnp.sqrt(params['bn2_var'] + eps)
    t2 = (params['conv2_b'] - params['bn2_mean']) * s2 + params['bn2_beta']

    # im2col weight layout (k*Cin + ci, Cout), BN scale folded in, bf16.
    w1 = (jnp.transpose(params['conv1_w'], (2, 1, 0)) * s1[None, None, :])
    w1 = w1.reshape(3 * cin, cin).astype(jnp.bfloat16)               # (192, 64)
    w2 = (jnp.transpose(params['conv2_w'], (2, 1, 0)) * s2[None, None, :])
    w2 = w2.reshape(3 * cin, 128).astype(jnp.bfloat16)               # (192, 128)
    # Fold the adaptive-avg-pool 1/L2 factor into the projection weight.
    wp = (jnp.transpose(params['proj_w'], (1, 0)) / float(L2)).astype(jnp.bfloat16)
    bp = params['proj_b'][None, :].astype(jnp.float32)               # (1, 128)
    t1 = t1[None, :].astype(jnp.float32)                             # (1, 64)
    t2 = t2[None, :].astype(jnp.float32)                             # (1, 128)

    # Adaptive batch blocking: only split the grid when every step still gets
    # >= 256 MXU rows; otherwise one grid step (nb=1) avoids per-step overhead
    # and keeps MXU row fill maximal.  At the test shape (B=2, L=16) -> nb=1.
    # TODO(synk): gate nb=2 on an actual multi-TC (v7x) chip query; on 1-TC
    #   chips nb=1 is always preferable regardless of row count.
    nb = 2 if (B % 2 == 0 and (B // 2) * L1 >= 256) else 1
    bb = B // nb

    flops = 2 * B * (L1p * 3 * cin * cin
                     + (L1p // 2 - 2) * 3 * cin * 128
                     + 128 * 128)
    bytes_accessed = (x_blc.size * 2
                      + (w1.size + w2.size + wp.size) * 2
                      + (t1.size + t2.size + bp.size) * 4
                      + B * 128 * 4)

    def whole(shape):                    # full (untiled) 2-D operand
        return pl.BlockSpec(shape, lambda b: (0, 0))

    out = pl.pallas_call(
        functools.partial(audio_encoder_kernel, valid_l2=L2),
        out_shape=jax.ShapeDtypeStruct((nb, bb, 128), jnp.float32),
        grid=(nb,),
        in_specs=[
            pl.BlockSpec((bb, Lpad, cin), lambda b: (b, 0, 0)),  # x batch block
            whole((3 * cin, cin)),                               # conv1 w (im2col, BN-scaled)
            whole((1, cin)),                                     # bn1 shift
            whole((3 * cin, 128)),                               # conv2 w (im2col, BN-scaled)
            whole((1, 128)),                                     # bn2 shift
            whole((128, 128)),                                   # projection weight (1/L2 folded)
            whole((1, 128)),                                     # projection bias
        ],
        out_specs=pl.BlockSpec((1, bb, 128), lambda b: (b, 0, 0)),
        compiler_params=pltpu.CompilerParams(
            dimension_semantics=("parallel",)),
        cost_estimate=pl.CostEstimate(flops=flops, transcendentals=0,
                                      bytes_accessed=bytes_accessed),
    )(x_blc, w1, t1, w2, t2, wp, bp)
    # (nb, bb, 128) is contiguous (B, 128): this reshape is a free bitcast.
    return out.reshape(B, 128)


def init_params(key):
    ks = jax.random.split(key, 14)
    n = lambda k, shape, s=0.1: s * jax.random.normal(k, shape, jnp.float32)
    return {
        'conv1_w': n(ks[0], (64, 64, 3)),     # (C_out, C_in, K) -- PyTorch layout
        'conv1_b': n(ks[1], (64,)),
        'bn1_gamma': 1.0 + n(ks[2], (64,)),
        'bn1_beta': n(ks[3], (64,)),
        'bn1_mean': n(ks[4], (64,)),
        'bn1_var': 1.0 + jax.random.uniform(ks[5], (64,), jnp.float32, 0.0, 0.5),
        'conv2_w': n(ks[6], (128, 64, 3)),
        'conv2_b': n(ks[7], (128,)),
        'bn2_gamma': 1.0 + n(ks[8], (128,)),
        'bn2_beta': n(ks[9], (128,)),
        'bn2_mean': n(ks[10], (128,)),
        'bn2_var': 1.0 + jax.random.uniform(ks[11], (128,), jnp.float32, 0.0, 0.5),
        'proj_w': n(ks[12], (128, 128)),      # (out, in) -- PyTorch layout
        'proj_b': n(ks[13], (128,)),
    }


def reference_forward(x_nchw, params, eps=1e-5):
    """Pure NumPy reference of the PyTorch forward (eval mode), float64."""
    p = {k: np.asarray(v, np.float64) for k, v in params.items()}
    x = np.asarray(x_nchw, np.float64)[:, 0]             # squeeze(1) -> (B, 64, L)

    def conv1d(x, w, b):
        Co, Ci, K = w.shape
        Lo = x.shape[-1] - K + 1
        out = np.zeros((x.shape[0], Co, Lo))
        for k in range(K):
            out += np.einsum('bil,oi->bol', x[:, :, k:k + Lo], w[:, :, k])
        return out + b[None, :, None]

    def bn(x, g, be, m, v):
        return ((x - m[None, :, None]) / np.sqrt(v[None, :, None] + eps)
                * g[None, :, None] + be[None, :, None])

    h = np.maximum(bn(conv1d(x, p['conv1_w'], p['conv1_b']),
                      p['bn1_gamma'], p['bn1_beta'], p['bn1_mean'], p['bn1_var']), 0.0)
    Lp = h.shape[-1] // 2
    h = h[:, :, :2 * Lp].reshape(h.shape[0], h.shape[1], Lp, 2).max(-1)   # MaxPool1d(2)
    h = np.maximum(bn(conv1d(h, p['conv2_w'], p['conv2_b']),
                      p['bn2_gamma'], p['bn2_beta'], p['bn2_mean'], p['bn2_var']), 0.0)
    feat = h.mean(-1)                                     # AdaptiveAvgPool1d(1) + squeeze
    y = np.maximum(feat @ p['proj_w'].T + p['proj_b'], 0.0)  # Linear + ReLU (+Dropout=id)
    return y


if __name__ == "__main__":
    key = jax.random.PRNGKey(0)
    k_x, k_p = jax.random.split(key)

    B, C, L = 2, 64, 16
    x = jax.random.normal(k_x, (B, 1, C, L), jnp.float32)   # (B, 1, 64, L)
    params = init_params(k_p)

    out = jax.block_until_ready(audio_encoder_forward(x, params))
    assert out.shape == (B, 128), out.shape

    ref = reference_forward(x, params)
    # bf16 matmul operands (f32 accumulation) -> slightly looser tolerance.
    np.testing.assert_allclose(np.asarray(out), ref, rtol=3e-2, atol=3e-2)

    print("KERNEL_OK")
</pallas_src>

<mosaic_0001>
module attributes {stable_mosaic.version = 11 : i64} {
  func.func @audio_encoder_kernel(%arg0: i32, %arg1: memref<2x18x64xbf16, #tpu.memory_space<vmem>>, %arg2: memref<192x64xbf16, #tpu.memory_space<vmem>>, %arg3: memref<1x64xf32, #tpu.memory_space<vmem>>, %arg4: memref<192x128xbf16, #tpu.memory_space<vmem>>, %arg5: memref<1x128xf32, #tpu.memory_space<vmem>>, %arg6: memref<128x128xbf16, #tpu.memory_space<vmem>>, %arg7: memref<1x128xf32, #tpu.memory_space<vmem>>, %arg8: memref<1x2x128xf32, #tpu.memory_space<vmem>>) attributes {dimension_semantics = [#tpu.dimension_semantics<parallel>], iteration_bounds = array<i64: 1>, scalar_prefetch = 0 : i64, scratch_operands = 0 : i64, tpu.core_type = #tpu.core_type<tc>, window_params = [{transform_indices = @transform_0, window_bounds = array<i64: 2, 18, 64>}, {pipeline_mode = #tpu.pipeline_mode<synchronous>, transform_indices = @transform_1, window_bounds = array<i64: 192, 64>}, {pipeline_mode = #tpu.pipeline_mode<synchronous>, transform_indices = @transform_2, window_bounds = array<i64: 1, 64>}, {pipeline_mode = #tpu.pipeline_mode<synchronous>, transform_indices = @transform_3, window_bounds = array<i64: 192, 128>}, {pipeline_mode = #tpu.pipeline_mode<synchronous>, transform_indices = @transform_4, window_bounds = array<i64: 1, 128>}, {pipeline_mode = #tpu.pipeline_mode<synchronous>, transform_indices = @transform_5, window_bounds = array<i64: 128, 128>}, {pipeline_mode = #tpu.pipeline_mode<synchronous>, transform_indices = @transform_6, window_bounds = array<i64: 1, 128>}, {transform_indices = @transform_7, window_bounds = array<i64: 1, 2, 128>}]} {
    %c0 = arith.constant 0 : index
    %c0_0 = arith.constant 0 : index
    %c0_1 = arith.constant 0 : index
    %0 = vector.load %arg1[%c0, %c0_0, %c0_1] : memref<2x18x64xbf16, #tpu.memory_space<vmem>>, vector<2x18x64xbf16>
    %1 = vector.extract_strided_slice %0 {offsets = [0, 0, 0], sizes = [2, 16, 64], strides = [1, 1, 1]} : vector<2x18x64xbf16> to vector<2x16x64xbf16>
    %2 = vector.extract_strided_slice %0 {offsets = [0, 1, 0], sizes = [2, 16, 64], strides = [1, 1, 1]} : vector<2x18x64xbf16> to vector<2x16x64xbf16>
    %3 = vector.extract_strided_slice %0 {offsets = [0, 2, 0], sizes = [2, 16, 64], strides = [1, 1, 1]} : vector<2x18x64xbf16> to vector<2x16x64xbf16>
    %4 = tpu.concatenate %1, %2, %3 in 2 : vector<2x16x64xbf16>, vector<2x16x64xbf16>, vector<2x16x64xbf16> -> vector<2x16x192xbf16>
    %5 = vector.shape_cast %4 : vector<2x16x192xbf16> to vector<32x192xbf16>
    %c0_2 = arith.constant 0 : index
    %c0_3 = arith.constant 0 : index
    %6 = vector.load %arg2[%c0_2, %c0_3] : memref<192x64xbf16, #tpu.memory_space<vmem>>, vector<192x64xbf16>
    %cst = arith.constant dense<0.000000e+00> : vector<32x64xf32>
    %7 = tpu.matmul %5, %6, %cst {dimension_numbers = #tpu.dot_dimension_numbers<[1], [0], [0], [1], [0, 0, 1, 1], [], []>} : vector<32x192xbf16>, vector<192x64xbf16>, vector<32x64xf32> -> vector<32x64xf32>
    %c0_4 = arith.constant 0 : index
    %c0_5 = arith.constant 0 : index
    %8 = vector.load %arg3[%c0_4, %c0_5] : memref<1x64xf32, #tpu.memory_space<vmem>>, vector<1x64xf32>
    %9 = vector.broadcast %8 : vector<1x64xf32> to vector<32x64xf32>
    %10 = arith.addf %7, %9 : vector<32x64xf32>
    %cst_6 = arith.constant 0.000000e+00 : f32
    %11 = vector.broadcast %cst_6 : f32 to vector<32x64xf32>
    %12 = arith.maximumf %10, %11 : vector<32x64xf32>
    %13 = vector.shape_cast %12 : vector<32x64xf32> to vector<2x8x2x64xf32>
    %14 = vector.extract_strided_slice %13 {offsets = [0, 0, 0, 0], sizes = [2, 8, 1, 64], strides = [1, 1, 1, 1]} : vector<2x8x2x64xf32> to vector<2x8x1x64xf32>
    %15 = vector.shape_cast %14 : vector<2x8x1x64xf32> to vector<2x8x64xf32>
    %16 = vector.extract_strided_slice %13 {offsets = [0, 0, 1, 0], sizes = [2, 8, 1, 64], strides = [1, 1, 1, 1]} : vector<2x8x2x64xf32> to vector<2x8x1x64xf32>
    %17 = vector.shape_cast %16 : vector<2x8x1x64xf32> to vector<2x8x64xf32>
    %18 = arith.maximumf %15, %17 : vector<2x8x64xf32>
    %19 = arith.truncf %18 : vector<2x8x64xf32> to vector<2x8x64xbf16>
    %20 = vector.extract_strided_slice %19 {offsets = [0, 0, 0], sizes = [2, 6, 64], strides = [1, 1, 1]} : vector<2x8x64xbf16> to vector<2x6x64xbf16>
    %21 = vector.extract_strided_slice %19 {offsets = [0, 1, 0], sizes = [2, 6, 64], strides = [1, 1, 1]} : vector<2x8x64xbf16> to vector<2x6x64xbf16>
    %22 = vector.extract_strided_slice %19 {offsets = [0, 2, 0], sizes = [2, 6, 64], strides = [1, 1, 1]} : vector<2x8x64xbf16> to vector<2x6x64xbf16>
    %23 = tpu.concatenate %20, %21, %22 in 2 : vector<2x6x64xbf16>, vector<2x6x64xbf16>, vector<2x6x64xbf16> -> vector<2x6x192xbf16>
    %24 = vector.shape_cast %23 : vector<2x6x192xbf16> to vector<12x192xbf16>
    %c0_7 = arith.constant 0 : index
    %c0_8 = arith.constant 0 : index
    %25 = vector.load %arg4[%c0_7, %c0_8] : memref<192x128xbf16, #tpu.memory_space<vmem>>, vector<192x128xbf16>
    %cst_9 = arith.constant dense<0.000000e+00> : vector<12x128xf32>
    %26 = tpu.matmul %24, %25, %cst_9 {dimension_numbers = #tpu.dot_dimension_numbers<[1], [0], [0], [1], [0, 0, 1, 1], [], []>} : vector<12x192xbf16>, vector<192x128xbf16>, vector<12x128xf32> -> vector<12x128xf32>
    %c0_10 = arith.constant 0 : index
    %c0_11 = arith.constant 0 : index
    %27 = vector.load %arg5[%c0_10, %c0_11] : memref<1x128xf32, #tpu.memory_space<vmem>>, vector<1x128xf32>
    %28 = vector.broadcast %27 : vector<1x128xf32> to vector<12x128xf32>
    %29 = arith.addf %26, %28 : vector<12x128xf32>
    %cst_12 = arith.constant 0.000000e+00 : f32
    %30 = vector.broadcast %cst_12 : f32 to vector<12x128xf32>
    %31 = arith.maximumf %29, %30 : vector<12x128xf32>
    %32 = vector.shape_cast %31 : vector<12x128xf32> to vector<2x6x128xf32>
    %33 = vector.extract_strided_slice %32 {offsets = [0, 0, 0], sizes = [2, 5, 128], strides = [1, 1, 1]} : vector<2x6x128xf32> to vector<2x5x128xf32>
    %cst_13 = arith.constant dense<0.000000e+00> : vector<2x128xf32>
    %34 = vector.multi_reduction <add>, %33, %cst_13 [1] : vector<2x5x128xf32> to vector<2x128xf32>
    %35 = arith.truncf %34 : vector<2x128xf32> to vector<2x128xbf16>
    %c0_14 = arith.constant 0 : index
    %c0_15 = arith.constant 0 : index
    %36 = vector.load %arg6[%c0_14, %c0_15] : memref<128x128xbf16, #tpu.memory_space<vmem>>, vector<128x128xbf16>
    %cst_16 = arith.constant dense<0.000000e+00> : vector<2x128xf32>
    %37 = tpu.matmul %35, %36, %cst_16 {dimension_numbers = #tpu.dot_dimension_numbers<[1], [0], [0], [1], [0, 0, 1, 1], [], []>} : vector<2x128xbf16>, vector<128x128xbf16>, vector<2x128xf32> -> vector<2x128xf32>
    %c0_17 = arith.constant 0 : index
    %c0_18 = arith.constant 0 : index
    %38 = vector.load %arg7[%c0_17, %c0_18] : memref<1x128xf32, #tpu.memory_space<vmem>>, vector<1x128xf32>
    %39 = vector.broadcast %38 : vector<1x128xf32> to vector<2x128xf32>
    %40 = arith.addf %37, %39 : vector<2x128xf32>
    %cst_19 = arith.constant 0.000000e+00 : f32
    %41 = vector.broadcast %cst_19 : f32 to vector<2x128xf32>
    %42 = arith.maximumf %40, %41 : vector<2x128xf32>
    %c0_20 = arith.constant 0 : index
    %c0_21 = arith.constant 0 : index
    %c0_22 = arith.constant 0 : index
    %43 = vector.load %arg8[%c0_20, %c0_21, %c0_22] : memref<1x2x128xf32, #tpu.memory_space<vmem>>, vector<1x2x128xf32>
    %44 = vector.shape_cast %43 : vector<1x2x128xf32> to vector<2x128xf32>
    %45 = vector.shape_cast %42 : vector<2x128xf32> to vector<1x2x128xf32>
    tpu.vector_store %arg8[%c0_20, %c0_21, %c0_22], %45 {strides = array<i32>} : memref<1x2x128xf32, #tpu.memory_space<vmem>>, vector<1x2x128xf32>,
    return
  }
  func.func @transform_0(%arg0: i32) -> (i32, i32, i32) {
    %c0_i32 = arith.constant 0 : i32
    %c0_i32_0 = arith.constant 0 : i32
    %c0_i32_1 = arith.constant 0 : i32
    return %arg0, %c0_i32, %c0_i32_0 : i32, i32, i32
  }
  func.func @transform_1(%arg0: i32) -> (i32, i32) {
    %c0_i32 = arith.constant 0 : i32
    %c0_i32_0 = arith.constant 0 : i32
    %c0_i32_1 = arith.constant 0 : i32
    return %c0_i32, %c0_i32_0 : i32, i32
  }
  func.func @transform_2(%arg0: i32) -> (i32, i32) {
    %c0_i32 = arith.constant 0 : i32
    %c0_i32_0 = arith.constant 0 : i32
    %c0_i32_1 = arith.constant 0 : i32
    return %c0_i32, %c0_i32_0 : i32, i32
  }
  func.func @transform_3(%arg0: i32) -> (i32, i32) {
    %c0_i32 = arith.constant 0 : i32
    %c0_i32_0 = arith.constant 0 : i32
    %c0_i32_1 = arith.constant 0 : i32
    return %c0_i32, %c0_i32_0 : i32, i32
  }
  func.func @transform_4(%arg0: i32) -> (i32, i32) {
    %c0_i32 = arith.constant 0 : i32
    %c0_i32_0 = arith.constant 0 : i32
    %c0_i32_1 = arith.constant 0 : i32
    return %c0_i32, %c0_i32_0 : i32, i32
  }
  func.func @transform_5(%arg0: i32) -> (i32, i32) {
    %c0_i32 = arith.constant 0 : i32
    %c0_i32_0 = arith.constant 0 : i32
    %c0_i32_1 = arith.constant 0 : i32
    return %c0_i32, %c0_i32_0 : i32, i32
  }
  func.func @transform_6(%arg0: i32) -> (i32, i32) {
    %c0_i32 = arith.constant 0 : i32
    %c0_i32_0 = arith.constant 0 : i32
    %c0_i32_1 = arith.constant 0 : i32
    return %c0_i32, %c0_i32_0 : i32, i32
  }
  func.func @transform_7(%arg0: i32) -> (i32, i32, i32) {
    %c0_i32 = arith.constant 0 : i32
    %c0_i32_0 = arith.constant 0 : i32
    %c0_i32_1 = arith.constant 0 : i32
    return %arg0, %c0_i32, %c0_i32_0 : i32, i32, i32
  }
}

</mosaic_0001>

<bundles_post_ra>
// kernel: tpu_custom_call.1
= control target key start
LH: loop header
LB: loop body
LE: loop exit
PB: predicated region body
PF: predicated region fallthrough
CT: control target
= control target key end

     0   :  { %vm50_vm0 = vsmask.f32 7424  ;;  %v1159_v9 = vmov 0   ;;  %vm79_vm1 = vcmask 1046528   ;;  %s1160_s12 = smov 64   ;;  %vm86_vm2 = vcmask 523264   ;;  %s1488_s0 = inlined_call_operand.vmem [shape: bf16[2,18,64], index: 0, kind: input, shape index: {}]   ;;  %s1489_s1 = inlined_call_operand.vmem [shape: bf16[192,64], index: 1, kind: input, shape index: {}]   ;;  %s1490_s2 = inlined_call_operand.vmem [shape: f32[1,64], index: 2, kind: input, shape index: {}]   ;;  %s1491_s3 = inlined_call_operand.vmem [shape: bf16[192,128], index: 3, kind: input, shape index: {}]   ;;  %s1492_s4 = inlined_call_operand.vmem [shape: f32[1,128], index: 4, kind: input, shape index: {}]   ;;  %s1493_s5 = inlined_call_operand.vmem [shape: bf16[128,128], index: 5, kind: input, shape index: {}]   ;;  %s1494_s6 = inlined_call_operand.vmem [shape: f32[1,128], index: 6, kind: input, shape index: {}]   ;;  %s1495_s7 = inlined_call_operand.hbm [shape: f32[1,2,128], index: 7, kind: output, shape index: {}]  }
   0x1   :  { %v1209_v0 = vld [vmem:[%s1488_s0] sm:$0xff]   ;;  %v1100_v1 = vld [vmem:[%s1488_s0 + $0x8] ss:$0 sps:$4 sm:$0x11]   ;;  %v1217_v2 = vld [vmem:[%s1488_s0 + $0xc] sm:$0xff]   ;;  %202 = vmatprep.subr.bf16.mxu0 %v1159_v9  ;;  %750 = vmatprep.subr.bf16.mxu1 %v1159_v9 }
   0x2   :  { %v52_v3 = vshrl.u32 %v1209_v0, 16  ;;  %v54_v4 = vshll.u32 %v1209_v0, 16  ;;  %v59_v5 = vshll.u32 %v1100_v1, 16  ;;  %v1102_v6 = vld [vmem:[%s1488_s0 + $0x14] ss:$0 sps:$4 sm:$0x11]  }
   0x3   :  { %v64_v7 = vshrl.u32 %v1217_v2, 16  ;;  %v66_v8 = vshll.u32 %v1217_v2, 16  ;;  %v1103_v10 = vld [vmem:[%s1489_s1] sm:$0xff]   ;;  %v71_v14 = vshll.u32 %v1102_v6, 16  ;;  %v1104_v16 = vld [vmem:[%s1489_s1 + $0x8] sm:$0xff]   ;;  %v80_v20 = vrot.slane %v1209_v0, 1 }
   0x4   :  { %v56_v11 = vrot.slane %v54_v4, 1  ;;  %v61_v12 = vrot.slane %v59_v5, 1  ;;  %203 = vmatpush1.bf16.msra.mxu0 %v1103_v10  ;;  %v1105_v21 = vld [vmem:[%s1489_s1 + $0x10] sm:$0xff]   ;;  %v81_v22 = vrot.slane %v1100_v1, 1  ;;  %v83_v25 = vrot.slane %v1217_v2, 1  ;;  %v1106_v27 = vld [vmem:[%s1489_s1 + $0x18] sm:$0xff]  }
   0x5   :  { %v68_v13 = vrot.slane %v66_v8, 1  ;;  %204 = vmatprep.subr.bf16.mxu0 %v1159_v9  ;;  %v73_v18 = vrot.slane %v71_v14, 1  ;;  %v84_v26 = vrot.slane %v1102_v6, 1  ;;  %v1107_v29 = vld [vmem:[%s1489_s1 + $0x20] sm:$0xff]   ;;  %v1108_v30 = vld [vmem:[%s1489_s1 + $0x28] sm:$0xff]   ;;  %v1109_v31 = vld [vmem:[%s1489_s1 + $0x30] sm:$0xff]  }
   0x6   :  { %v57_v15 = vor.u32 %v56_v11, %v52_v3  ;;  %v82_v24 = vsel %vm79_vm1, %v80_v20, %v81_v22  ;;  %v1110_v32 = vld [vmem:[%s1489_s1 + $0x38] sm:$0xff]  }
   0x7   :  { %v69_v17 = vor.u32 %v68_v13, %v64_v7  ;;  %1022 = vmatprep.mubr.msk.bf16.mxu0 %vm86_vm2, %v82_v24  ;;  %v85_v28 = vsel %vm79_vm1, %v83_v25, %v84_v26 }
   0x8   :  { %v62_v19 = vsel %vm50_vm0, %v57_v15, %v61_v12  ;;  %205 = vmatpush1.bf16.msra.mxu0 %v1104_v16 }
   0x9   :  { %75 = vrot.lane.b32.xlu0 %v62_v19, %s1160_s12  ;;  %v74_v23 = vsel %vm50_vm0, %v69_v17, %v73_v18  ;;  %206 = vmatprep.subr.bf16.mxu0 %v1159_v9 }
   0xc   :  { %207 = vmatpush1.bf16.msra.mxu0 %v1105_v21 }
   0xd   :  { %77 = vrot.lane.b32.xlu0 %v74_v23, %s1160_s12  ;;  %208 = vmatprep.subr.bf16.mxu0 %v1159_v9 }
  0x10   :  { %209 = vmatpush1.bf16.msra.mxu0 %v1106_v27 }
  0x11   :  { %210 = vmatprep.subr.bf16.mxu0 %v1159_v9 }
  0x14   :  { %211 = vmatpush1.bf16.msra.mxu0 %v1107_v29 }
  0x15   :  { %212 = vmatprep.subr.bf16.mxu0 %v1159_v9 }
  0x18   :  { %213 = vmatpush1.bf16.msra.mxu0 %v1108_v30 }
  0x19   :  { %214 = vmatprep.subr.bf16.mxu0 %v1159_v9 }
  0x1c   :  { %215 = vmatpush1.bf16.msra.mxu0 %v1109_v31 }
  0x1d   :  { %216 = vmatprep.subr.bf16.mxu0 %v1159_v9 }
  0x1e   :  { %12 = vsyncpa [#allocation3], 0  ;;  %v1111_v33 = vld [vmem:[%s1489_s1 + $0x40] sm:$0xff]   ;;  %v1112_v34 = vld [vmem:[%s1489_s1 + $0x48] sm:$0xff]   ;;  %v1161_v46 = vmov 1983009808   ;;  %v263_v48 = vlaneseq }
  0x1f   :  { %v1113_v35 = vld [vmem:[%s1489_s1 + $0x50] sm:$0xff]   ;;  %v1114_v36 = vld [vmem:[%s1489_s1 + $0x58] sm:$0xff]   ;;  %v1115_v41 = vld [vmem:[%s1491_s3] sm:$0xff]   ;;  %v261_v47 = vunpack.c.l.s4 %v1161_v46  ;;  %vm448_vm3 = vcmask 1041409   ;;  %vm451_vm4 = vcmask 1042434   ;;  %vm454_vm5 = vcmask 1043459  }
  0x20   :  { %217 = vmatpush1.bf16.msra.mxu0 %v1110_v32  ;;  %751 = vmatpush1.bf16.msra.mxu1 %v1115_v41  ;;  %v1116_v42 = vld [vmem:[%s1491_s3 + $0x8] sm:$0xff]   ;;  %v1117_v43 = vld [vmem:[%s1491_s3 + $0x10] sm:$0xff]   ;;  %v1118_v44 = vld [vmem:[%s1491_s3 + $0x18] sm:$0xff]   ;;  %v1309_v50 = vshrl.u32 %v263_v48, 7  ;;  %vm457_vm6 = vcmask 1044484   ;;  %vm460_vm7 = vcmask 1045509  }
  0x21   :  { %218 = vmatprep.subr.bf16.mxu0 %v1159_v9  ;;  %752 = vmatprep.subr.bf16.mxu1 %v1159_v9  ;;  %v1119_v45 = vld [vmem:[%s1491_s3 + $0x20] sm:$0xff]   ;;  %v262_v49 = vunpack.c.0.s8 %v261_v47  ;;  %vm1164_vm8 = vmmov 0   ;;  %vm854_vm9 = vcmask 1044480   ;;  %s1165_s25 = smov [#allocation2]  }
  0x22   :  { %v1009_v51 = vld [vmem:[%s1490_s2] ss:$0 sm:$0xff]  ;;  %s997_s26 = sshll.u32 %s1165_s25, 4  ;;  %s998_s26 = int_to_ptr.vmem [resolvable:$true] %s997_s26 }
  0x23   :  { %v1315_v54 = vsub.s32 %v262_v49, %v1309_v50  ;;  %s1135_s27 = scalar_lea.vmem %s998_s26, 32  ;;  %p1140_p1 = scmp.lt.s32.totalorder %s998_s26, %s998_s26 }
  0x24   :  { %219 = vmatpush1.bf16.msra.mxu0 %v1111_v33  ;;  %753 = vmatpush1.bf16.msra.mxu1 %v1116_v42  ;;  %p1136_p0 = scmp.ne.s32.totalorder %s998_s26, %s1135_s27  ;;  %p1141_p2 = scmp.lt.s32.totalorder %s1135_s27, %s1135_s27 }
  0x25   :  { %220 = vmatprep.subr.bf16.mxu0 %v1159_v9  ;;  %754 = vmatprep.subr.bf16.mxu1 %v1159_v9 }
  0x26   :  { %p1142_p3 = por %p1141_p2, %p1140_p1 }
  0x28   :  { %221 = vmatpush1.bf16.msra.mxu0 %v1112_v34  ;;  %755 = vmatpush1.bf16.msra.mxu1 %v1117_v43  ;;  %p1143_p4 = pnand %p1142_p3, %p1136_p0 }
  0x29   :  { %222 = vmatprep.subr.bf16.mxu0 %v1159_v9  ;;  %756 = vmatprep.subr.bf16.mxu1 %v1159_v9 }
  0x2c   :  { %223 = vmatpush1.bf16.msra.mxu0 %v1113_v35  ;;  %757 = vmatpush1.bf16.msra.mxu1 %v1118_v44 }
  0x2d   :  { %224 = vmatprep.subr.bf16.mxu0 %v1159_v9  ;;  %758 = vmatprep.subr.bf16.mxu1 %v1159_v9 }
  0x30   :  { %225 = vmatpush1.bf16.msra.mxu0 %v1114_v36  ;;  %759 = vmatpush1.bf16.msra.mxu1 %v1119_v45 }
  0x31   :  { %760 = vmatprep.subr.bf16.mxu1 %v1159_v9 }
  0x7b   :  { %v76_v37 = vpop.permute.xlu0 %75 }
  0x7c   :  { %v88_v38 = vsel %vm86_vm2, %v1209_v0, %v76_v37 }
  0x7d   :  { %235 = vmatmul.mubr.bf16.vlgmr.msra.gmra.mrb[0].mxu0 %v88_v38 }
  0x7e   :  { %1023 = vmatprep.mubr.msk.bf16.mxu0 %vm86_vm2, %v85_v28 }
  0x7f   :  { %v78_v39 = vpop.permute.xlu0 %77 }
  0x80   :  { %v91_v40 = vsel %vm86_vm2, %v1217_v2, %v78_v39 }
  0x85   :  { %243 = vmatmul.mubr.bf16.gmra.mrb[4].mxu0 %v91_v40 }
 0x150   :  { %v236_v52 = vpop.f32.mrb[0].mxu0 }
 0x151   :  { %v237_v53 = vadd.f32 %v1009_v51, %v236_v52  ;;  %v238_v55 = vpop.f32.mrb[1].mxu0 }
 0x152   :  { %v239_v56 = vpop.f32.mrb[2].mxu0 }
 0x153   :  { %v251_v57 = vmax.f32 %v237_v53, 0.0  ;;  %v240_v58 = vadd.f32 %v1009_v51, %v239_v56  ;;  %v241_v59 = vpop.f32.mrb[3].mxu0 }
 0x155   :  { %v259_v60 = vcombine.high %v251_v57, %v251_v57  ;;  %v266_v61 = vrot.slane %v251_v57, %v1315_v54  ;;  %v252_v62 = vmax.f32 %v240_v58, 0.0 }
 0x157   :  { %v273_v63 = vrot.slane %v259_v60, %v1315_v54  ;;  %v274_v0 = vcombine.high %v266_v61, %v266_v61  ;;  %v1024_v1 = vrot.slane %v266_v61, 9  ;;  %v276_v2 = vcombine.high %v252_v62, %v252_v62 }
 0x158   :  { %v283_v3 = vrot.slane %v252_v62, %v1315_v54  ;;  %v244_v4 = vpop.f32.mrb[4].mxu0 }
 0x159   :  { %v275_v5 = vcombine.high %v273_v63, %v273_v63  ;;  %v1025_v6 = vrot.slane %v274_v0, 9  ;;  %v1026_v7 = vrot.slane %v273_v63, 9  ;;  %v391_v8 = vmax.f32 %v266_v61, %v1024_v1  ;;  %v246_v10 = vpop.f32.mrb[5].mxu0 }
 0x15a   :  { %v290_v11 = vrot.slane %v276_v2, %v1315_v54  ;;  %v291_v12 = vcombine.high %v283_v3, %v283_v3  ;;  %v1028_v13 = vrot.slane %v283_v3, 9  ;;  %v245_v14 = vadd.f32 %v1009_v51, %v244_v4  ;;  %v247_v15 = vpop.f32.mrb[6].mxu0 }
 0x15b   :  { %v1027_v16 = vrot.slane %v275_v5, 9  ;;  %v392_v17 = vmax.f32 %v274_v0, %v1025_v6  ;;  %v393_v18 = vmax.f32 %v273_v63, %v1026_v7  ;;  %v249_v19 = vpop.f32.mrb[7].mxu0  ;;  %v407_v20 = vpack.c.bf16 %v391_v8, %v391_v8 }
 0x15c   :  { %v1029_v21 = vrot.slane %v291_v12, 9  ;;  %v395_v22 = vmax.f32 %v283_v3, %v1028_v13  ;;  %v1321_v26 = vcombine.high %v290_v11, %v290_v11  ;;  %v1030_v27 = vrot.slane %v290_v11, 9 }
 0x15d   :  { %v394_v23 = vmax.f32 %v275_v5, %v1027_v16  ;;  %v408_v24 = vpack.c.bf16 %v392_v17, %v392_v17  ;;  %v409_v25 = vpack.c.bf16 %v393_v18, %v393_v18  ;;  %v253_v30 = vmax.f32 %v245_v14, 0.0 }
 0x15e   :  { %v396_v28 = vmax.f32 %v291_v12, %v1029_v21  ;;  %v411_v29 = vpack.c.bf16 %v395_v22, %v395_v22  ;;  %v248_v34 = vadd.f32 %v1009_v51, %v247_v15  ;;  %v435_v39 = vunpack.c.l.b16 %v407_v20 }
 0x15f   :  { %v410_v31 = vpack.c.bf16 %v394_v23, %v394_v23  ;;  %v436_v32 = vunpack.c.l.b16 %v408_v24  ;;  %v1323_v33 = vunpack.c.l.b16 %v409_v25  ;;  %v293_v37 = vcombine.high %v253_v30, %v253_v30 }
 0x160   :  { %v412_v35 = vpack.c.bf16 %v396_v28, %v396_v28  ;;  %v1325_v36 = vunpack.c.l.b16 %v411_v29  ;;  %v300_v38 = vrot.slane %v253_v30, %v1315_v54  ;;  %v1031_v44 = vrot.slane %v1321_v26, 9 }
 0x161   :  { %v1328_v40 = vunpack.c.l.b16 %v410_v31  ;;  %v447_v41 = vrot.slane %v436_v32, 7  ;;  %v478_v42 = vrot.slane %v1323_v33, 7  ;;  %v450_v43 = vrot.slane %v1323_v33, 6 }
 0x162   :  { %v1333_v45 = vunpack.c.l.b16 %v412_v35  ;;  %v307_v46 = vrot.slane %v293_v37, %v1315_v54  ;;  %v456_v48 = vrot.slane %v1325_v36, 4  ;;  %v308_v49 = vcombine.high %v300_v38, %v300_v38 }
 0x163   :  { %v1337_v47 = vsel %vm448_vm3, %v447_v41, %v435_v39  ;;  %v1032_v51 = vrot.slane %v300_v38, 9  ;;  %v254_v55 = vmax.f32 %v248_v34, 0.0  ;;  %v397_v56 = vmax.f32 %v290_v11, %v1030_v27 }
 0x164   :  { %v309_v52 = vcombine.high %v307_v46, %v307_v46  ;;  %v1034_v53 = vrot.slane %v307_v46, 9  ;;  %v1033_v57 = vrot.slane %v308_v49, 9  ;;  %v479_v59 = vsel %vm448_vm3, %v478_v42, %v436_v32 }
 0x165   :  { %v399_v58 = vmax.f32 %v300_v38, %v1032_v51  ;;  %v480_v60 = vrot.slane %v1328_v40, 6  ;;  %v310_v63 = vcombine.high %v254_v55, %v254_v55  ;;  %v317_v0 = vrot.slane %v254_v55, %v1315_v54 }
 0x166   :  { %v1035_v61 = vrot.slane %v309_v52, 9  ;;  %v401_v62 = vmax.f32 %v307_v46, %v1034_v53  ;;  %v510_v1 = vrot.slane %v1325_v36, 6  ;;  %v400_v2 = vmax.f32 %v308_v49, %v1033_v57 }
 0x167   :  { %v415_v3 = vpack.c.bf16 %v399_v58, %v399_v58  ;;  %v413_v4 = vpack.c.bf16 %v397_v56, %v397_v56  ;;  %v324_v7 = vrot.slane %v310_v63, %v1315_v54  ;;  %v325_v8 = vcombine.high %v317_v0, %v317_v0 }
 0x168   :  { %v402_v5 = vmax.f32 %v309_v52, %v1035_v61  ;;  %v417_v6 = vpack.c.bf16 %v401_v62, %v401_v62  ;;  %v508_v10 = vrot.slane %v1328_v40, 7  ;;  %v416_v11 = vpack.c.bf16 %v400_v2, %v400_v2  ;;  %v1120_v52 = vld [vmem:[%s1491_s3 + $0x28] sm:$0xff]   ;;  %v1121_v62 = vld [vmem:[%s1491_s3 + $0x30] sm:$0xff]  }
 0x169   :  { %v1036_v12 = vrot.slane %v317_v0, 9  ;;  %v481_v13 = vsel %vm451_vm4, %v480_v60, %v479_v59  ;;  %v326_v16 = vcombine.high %v324_v7, %v324_v7  ;;  %v1037_v17 = vrot.slane %v325_v8, 9  ;;  %761 = vmatpush1.bf16.msra.mxu1 %v1120_v52 }
 0x16a   :  { %v418_v14 = vpack.c.bf16 %v402_v5, %v402_v5  ;;  %v1347_v15 = vunpack.c.l.b16 %v417_v6  ;;  %v441_v18 = vunpack.c.l.b16 %v415_v3  ;;  %v442_v19 = vunpack.c.l.b16 %v416_v11  ;;  %762 = vmatprep.subr.bf16.mxu1 %v1159_v9 }
 0x16b   :  { %v1038_v20 = vrot.slane %v324_v7, 9  ;;  %v403_v21 = vmax.f32 %v317_v0, %v1036_v12  ;;  %v476_v24 = vunpack.c.l.b16 %v413_v4  ;;  %v482_v25 = vrot.slane %v1325_v36, 5  ;;  %v1123_v36 = vld [vmem:[%s1491_s3 + $0x40] sm:$0xff]  }
 0x16c   :  { %v1349_v22 = vunpack.c.l.b16 %v418_v14  ;;  %v488_v23 = vrot.slane %v1347_v15, 7  ;;  %v462_v27 = vrot.slane %v442_v19, 7  ;;  %v404_v28 = vmax.f32 %v325_v8, %v1037_v17 }
 0x16d   :  { %v405_v29 = vmax.f32 %v324_v7, %v1038_v20  ;;  %v419_v30 = vpack.c.bf16 %v403_v21, %v403_v21  ;;  %v464_v31 = vrot.slane %v1347_v15, 6  ;;  %v1039_v32 = vrot.slane %v326_v16, 9  ;;  %763 = vmatpush1.bf16.msra.mxu1 %v1121_v62 }
 0x16e   :  { %v483_v34 = vsel %vm454_vm5, %v482_v25, %v481_v13  ;;  %v484_v35 = vrot.slane %v1333_v45, 4  ;;  %v463_v37 = vsel %vm448_vm3, %v462_v27, %v441_v18  ;;  %v420_v38 = vpack.c.bf16 %v404_v28, %v404_v28  ;;  %764 = vmatprep.subr.bf16.mxu1 %v1159_v9 }
 0x16f   :  { %v421_v39 = vpack.c.bf16 %v405_v29, %v405_v29  ;;  %v1357_v41 = vunpack.c.l.b16 %v419_v30  ;;  %v486_v46 = vrot.slane %v476_v24, 3  ;;  %v489_v49 = vsel %vm448_vm3, %v488_v23, %v442_v19 }
 0x170   :  { %v485_v42 = vsel %vm457_vm6, %v484_v35, %v483_v34  ;;  %v490_v51 = vrot.slane %v1349_v22, 6  ;;  %v518_v53 = vrot.slane %v1349_v22, 7  ;;  %v446_v55 = vunpack.c.l.b16 %v420_v38  ;;  %v1125_v38 = vld [vmem:[%s1491_s3 + $0x50] sm:$0xff]  }
 0x171   :  { %v477_v56 = vunpack.c.l.b16 %v421_v39  ;;  %v492_v57 = vrot.slane %v1357_v41, 5  ;;  %v487_v58 = vsel %vm460_vm7, %v486_v46, %v485_v42  ;;  %v514_v59 = vrot.slane %v476_v24, 4  ;;  %v1126_v39 = vld [vmem:[%s1491_s3 + $0x58] sm:$0xff]  }
 0x172   :  { %v491_v60 = vsel %vm451_vm4, %v490_v51, %v489_v49  ;;  %v398_v61 = vmax.f32 %v1321_v26, %v1031_v44  ;;  %v520_v63 = vrot.slane %v1357_v41, 6  ;;  %v498_v0 = vpack.c.b16 %v487_v58, %v487_v58 }
 0x173   :  { %v493_v2 = vsel %vm454_vm5, %v492_v57, %v491_v60  ;;  %v494_v3 = vrot.slane %v446_v55, 4  ;;  %v496_v4 = vrot.slane %v477_v56, 3  ;;  %v452_v26 = vsel %vm451_vm4, %v450_v43, %v1337_v47 }
 0x174   :  { %v414_v5 = vpack.c.bf16 %v398_v61, %v398_v61  ;;  %v509_v44 = vsel %vm448_vm3, %v508_v10, %v1323_v33  ;;  %500 = vrot.lane.b32.xlu1 %v498_v0, %s1160_s12  ;;  %v512_v8 = vrot.slane %v1333_v45, 5  ;;  %v453_v11 = vrot.slane %v1328_v40, 5  ;;  %v1122_v33 = vld [vmem:[%s1491_s3 + $0x38] sm:$0xff]  }
 0x175   :  { %v495_v6 = vsel %vm457_vm6, %v494_v3, %v493_v2  ;;  %v511_v7 = vsel %vm451_vm4, %v510_v1, %v509_v44  ;;  %v406_v43 = vmax.f32 %v326_v16, %v1039_v32  ;;  %v465_v47 = vsel %vm451_vm4, %v464_v31, %v463_v37  ;;  %765 = vmatpush1.bf16.msra.mxu1 %v1122_v33  ;;  %v1124_v37 = vld [vmem:[%s1491_s3 + $0x48] sm:$0xff]  }
 0x176   :  { %v497_v12 = vsel %vm460_vm7, %v496_v4, %v495_v6  ;;  %v506_v13 = vunpack.c.l.b16 %v414_v5  ;;  %v459_v14 = vrot.slane %v1333_v45, 3  ;;  %v513_v1 = vsel %vm454_vm5, %v512_v8, %v511_v7  ;;  %766 = vmatprep.subr.bf16.mxu1 %v1159_v9 }
 0x177   :  { %v499_v10 = vpack.c.b16 %v497_v12, %v497_v12  ;;  %v455_v17 = vsel %vm454_vm5, %v453_v11, %v452_v26  ;;  %v515_v40 = vsel %vm457_vm6, %v514_v59, %v513_v1  ;;  %v422_v19 = vpack.c.bf16 %v406_v43, %v406_v43 }
 0x178   :  { %v516_v18 = vrot.slane %v506_v13, 3  ;;  %v458_v16 = vsel %vm457_vm6, %v456_v48, %v455_v17  ;;  %v519_v45 = vsel %vm448_vm3, %v518_v53, %v1347_v15  ;;  %v522_v21 = vrot.slane %v446_v55, 5 }
 0x179   :  { %502 = vrot.lane.b32.xlu1 %v499_v10, %s1160_s12  ;;  %v461_v20 = vsel %vm460_vm7, %v459_v14, %v458_v16  ;;  %v507_v24 = vunpack.c.l.b16 %v422_v19  ;;  %v521_v25 = vsel %vm451_vm4, %v520_v63, %v519_v45  ;;  %v524_v27 = vrot.slane %v477_v56, 4  ;;  %767 = vmatpush1.bf16.msra.mxu1 %v1123_v36  ;;  %v1128_v19 = vld [vmem:[%s1493_s5 + $0x8] sm:$0xff]   ;;  %v1130_v45 = vld [vmem:[%s1493_s5 + $0x18] sm:$0xff]  }
 0x17a   :  { %v517_v23 = vsel %vm460_vm7, %v516_v18, %v515_v40  ;;  %v523_v48 = vsel %vm454_vm5, %v522_v21, %v521_v25  ;;  %v466_v28 = vrot.slane %v1349_v22, 5  ;;  %v468_v15 = vrot.slane %v1357_v41, 4  ;;  %768 = vmatprep.subr.bf16.mxu1 %v1159_v9  ;;  %v1127_v18 = vld [vmem:[%s1493_s5] sm:$0xff]   ;;  %v1134_v25 = vld [vmem:[%s1493_s5 + $0x38] sm:$0xff]  }
 0x17b   :  { %v525_v29 = vsel %vm457_vm6, %v524_v27, %v523_v48  ;;  %v526_v30 = vrot.slane %v507_v24, 3  ;;  %v470_v31 = vrot.slane %v446_v55, 3  ;;  %v1162_v41 = vmov 1966171168   ;;  %v1131_v21 = vld [vmem:[%s1493_s5 + $0x20] sm:$0xff]   ;;  %v1133_v24 = vld [vmem:[%s1493_s5 + $0x30] sm:$0xff]  }
 0x17c   :  { %v467_v32 = vsel %vm454_vm5, %v466_v28, %v465_v47  ;;  %v540_v42 = vunpack.c.l.s4 %v1162_v41  ;;  %v472_v49 = vpack.c.b16 %v461_v20, %v461_v20  ;;  %v528_v51 = vpack.c.b16 %v517_v23, %v517_v23  ;;  %v1129_v20 = vld [vmem:[%s1493_s5 + $0x10] sm:$0xff]   ;;  %v1132_v23 = vld [vmem:[%s1493_s5 + $0x28] sm:$0xff]   ;;  %v1040_v27 = vld [vmem:[%s1492_s4] ss:$0 sm:$0xff] }
 0x17d   :  { %v527_v34 = vsel %vm460_vm7, %v526_v30, %v525_v29  ;;  %v469_v35 = vsel %vm457_vm6, %v468_v15, %v467_v32  ;;  %769 = vmatpush1.bf16.msra.mxu1 %v1124_v37  ;;  %v1163_v16 = vmov 0.0  }
 0x17e   :  { %v471_v22 = vsel %vm460_vm7, %v470_v31, %v469_v35  ;;  %770 = vmatprep.subr.bf16.mxu1 %v1159_v9  ;;  %v541_v46 = vunpack.c.0.s8 %v540_v42  ;;  %v529_v59 = vpack.c.b16 %v527_v34, %v527_v34  ;;  %1072 = vmatprep.subr.bf16.mxu0 %v1163_v16 }
 0x17f   :  { %v473_v57 = vpack.c.b16 %v471_v22, %v471_v22  ;;  %1073 = vmatpush3.bf16.msra.mxu0 %v1127_v18  ;;  %1088 = vmatprep.mubr.msk.bf16.mxu0 %vm1164_vm8, %v1163_v16 }
 0x180   :  { %v544_v52 = vsub.s32 %v541_v46, %v1309_v50  ;;  %1074 = vmatprep.subr.bf16.mxu0 %v1163_v16 }
 0x181   :  { %771 = vmatpush1.bf16.msra.mxu1 %v1125_v38 }
 0x182   :  { %772 = vmatprep.subr.bf16.mxu1 %v1159_v9 }
 0x183   :  { %1075 = vmatpush3.bf16.msra.mxu0 %v1128_v19 }
 0x184   :  { %1076 = vmatprep.subr.bf16.mxu0 %v1163_v16 }
 0x185   :  { %773 = vmatpush1.bf16.msra.mxu1 %v1126_v39 }
 0x187   :  { %1077 = vmatpush3.bf16.msra.mxu0 %v1129_v20 }
 0x188   :  { %1078 = vmatprep.subr.bf16.mxu0 %v1163_v16 }
 0x18b   :  { %1079 = vmatpush3.bf16.msra.mxu0 %v1130_v45 }
 0x18c   :  { %1080 = vmatprep.subr.bf16.mxu0 %v1163_v16 }
 0x18f   :  { %1081 = vmatpush3.bf16.msra.mxu0 %v1131_v21 }
 0x190   :  { %1082 = vmatprep.subr.bf16.mxu0 %v1163_v16 }
 0x193   :  { %1083 = vmatpush3.bf16.msra.mxu0 %v1132_v23 }
 0x194   :  { %1084 = vmatprep.subr.bf16.mxu0 %v1163_v16 }
 0x197   :  { %1085 = vmatpush3.bf16.msra.mxu0 %v1133_v24 }
 0x198   :  { %1086 = vmatprep.subr.bf16.mxu0 %v1163_v16 }
 0x19b   :  { %1087 = vmatpush3.bf16.msra.mxu0 %v1134_v25 }
 0x1e6   :  { %v501_v53 = vpop.permute.xlu1 %500 }
 0x1e7   :  { %v532_v55 = vsel %vm86_vm2, %v472_v49, %v501_v53 }
 0x1e8   :  { %v538_v56 = vcombine.low %v532_v55, %v528_v51 }
 0x1ea   :  { %v545_v58 = vrot.slane %v538_v56, %v544_v52 }
 0x1eb   :  { %v503_v60 = vpop.permute.xlu1 %502 }
 0x1ec   :  { %v535_v61 = vsel %vm86_vm2, %v473_v57, %v503_v60  ;;  %v546_v62 = vcombine.high %v545_v58, %v545_v58  ;;  %v553_v9 = vrot.slane %v545_v58, %v544_v52 }
 0x1ed   :  { %v562_v63 = vcombine.low %v535_v61, %v529_v59 }
 0x1ee   :  { %v560_v0 = vrot.slane %v546_v62, %v544_v52  ;;  %v561_v3 = vcombine.high %v553_v9, %v553_v9 }
 0x1ef   :  { %v569_v2 = vrot.slane %v562_v63, %v544_v52 }
 0x1f0   :  { %v617_v4 = vcombine.low %v553_v9, %v560_v0 }
 0x1f1   :  { %v570_v5 = vcombine.high %v569_v2, %v569_v2  ;;  %v577_v26 = vrot.slane %v569_v2, %v544_v52 }
 0x1f2   :  { %v626_v7 = vrot.slane %v617_v4, %v544_v52 }
 0x1f3   :  { %v584_v50 = vrot.slane %v570_v5, %v544_v52  ;;  %v585_v44 = vcombine.high %v577_v26, %v577_v26  ;;  %v618_v6 = vcombine.low %v561_v3, %v577_v26 }
 0x1f5   :  { %v619_v8 = vcombine.low %v584_v50, %v585_v44  ;;  %v633_v11 = vrot.slane %v618_v6, %v544_v52 }
 0x1f7   :  { %v640_v12 = vrot.slane %v619_v8, %v544_v52  ;;  %v642_v13 = vcombine.high %v626_v7, %v633_v11  ;;  %v641_v43 = vcombine.low %v626_v7, %v633_v11  ;;  %v1054_v11 = vld [vmem:[%s1494_s6] ss:$0 sm:$0xff] }
 0x1f9   :  { %v643_v47 = vcombine.high %v640_v12, %v640_v12  ;;  %v657_v33 = vrot.slane %v642_v13, %v544_v52  ;;  %v650_v10 = vrot.slane %v641_v43, %v544_v52  ;;  %v664_v14 = vrot.slane %v640_v12, %v544_v52 }
 0x1fb   :  { %v671_v1 = vrot.slane %v643_v47, %v544_v52  ;;  %v672_v17 = vcombine.low %v650_v10, %v664_v14 }
 0x1fd   :  { %v673_v40 = vcombine.low %v657_v33, %v671_v1 }
 0x1ff   :  { %1053 = vmatprep.mubr.msk.bf16.mxu1 %vm86_vm2, %v673_v40 }
 0x200   :  { %783 = vmatmul.mubr.bf16.vlgmr.msra.gmra.mrb[0].mxu1 %v672_v17 }
 0x2d3   :  { %v784_v36 = vpop.f32.mrb[0].mxu1 }
 0x2d4   :  { %v785_v48 = vadd.f32 %v1040_v27, %v784_v36  ;;  %v786_v28 = vpop.f32.mrb[1].mxu1 }
 0x2d5   :  { %v787_v15 = vpop.f32.mrb[2].mxu1 }
 0x2d6   :  { %v791_v29 = vmax.f32 %v785_v48, 0.0  ;;  %v788_v30 = vadd.f32 %v1040_v27, %v787_v15  ;;  %v789_v31 = vpop.f32.mrb[3].mxu1 }
 0x2d8   :  { %v795_v32 = vcombine.high %v791_v29, %v791_v29  ;;  %v802_v34 = vrot.slane %v791_v29, %v1315_v54  ;;  %v792_v35 = vmax.f32 %v788_v30, 0.0 }
 0x2da   :  { %v809_v37 = vrot.slane %v795_v32, %v1315_v54  ;;  %v810_v22 = vcombine.high %v802_v34, %v802_v34  ;;  %v818_v38 = vrot.slane %v792_v35, %v1315_v54 }
 0x2dc   :  { %v820_v39 = vcombine.low %v802_v34, %v810_v22  ;;  %v811_v41 = vcombine.high %v809_v37, %v809_v37  ;;  %v819_v42 = vcombine.high %v818_v38, %v818_v38  ;;  %v834_v49 = vrot.slane %v809_v37, %v1315_v54 }
 0x2de   :  { %v827_v46 = vrot.slane %v820_v39, %v1315_v54  ;;  %v836_v51 = vcombine.low %v811_v41, %v818_v38  ;;  %v850_v55 = vrot.slane %v819_v42, %v1315_v54 }
 0x2e0   :  { %v835_v52 = vcombine.low %v827_v46, %v834_v49  ;;  %v843_v53 = vrot.slane %v836_v51, %v1315_v54 }
 0x2e2   :  { %v855_v56 = vsel %vm854_vm9, %v835_v52, 0.0  ;;  %v851_v57 = vcombine.low %v843_v53, %v850_v55 }
 0x2e3   :  { %v856_v58 = vrot.slane %v855_v56, 4 }
 0x2e4   :  { %v862_v59 = vsel %vm854_vm9, %v851_v57, 0.0 }
 0x2e5   :  { %v857_v60 = vadd.f32 %v856_v58, %v855_v56  ;;  %v863_v61 = vrot.slane %v862_v59, 4 }
 0x2e7   :  { %v858_v62 = vrot.slane %v857_v60, 2  ;;  %v864_v9 = vadd.f32 %v863_v61, %v862_v59 }
 0x2e9   :  { %v859_v63 = vadd.f32 %v858_v62, %v857_v60  ;;  %v865_v0 = vrot.slane %v864_v9, 2 }
 0x2eb   :  { %v860_v2 = vrot.slane %v859_v63, 1  ;;  %v866_v3 = vadd.f32 %v865_v0, %v864_v9 }
 0x2ed   :  { %v861_v4 = vadd.f32 %v860_v2, %v859_v63  ;;  %v867_v5 = vrot.slane %v866_v3, 1 }
 0x2ef   :  { %v869_v26 = vpack.c.bf16 %v861_v4, %v861_v4  ;;  %v868_v50 = vadd.f32 %v867_v5, %v866_v3 }
 0x2f1   :  { %v870_v44 = vpack.c.bf16 %v868_v50, %v868_v50  ;;  %v896_v6 = vunpack.c.l.b16 %v869_v26 }
 0x2f3   :  { %v897_v7 = vunpack.c.l.b16 %v870_v44 }
 0x2f5   :  { %v898_v54 = vsel %vm448_vm3, %v897_v7, %v896_v6 }
 0x2f6   :  { %v899_v8 = vpack.c.b16 %v898_v54, %v898_v54 }
 0x2f8   :  { %1089 = vmatmul.mubr.bf16.vlgmr.msra.gmra.mrb[8].mxu0 %v899_v8 }
 0x3cb   :  { %v983_v12 = vpop.f32.mrb[8].mxu0 }
 0x3cc   :  { %v984_v13 = vadd.f32 %v1054_v11, %v983_v12  ;;  %v1090_v43 = vpop.f32.mrb[9].mxu0 }
 0x3cd   :  { %v986_v47 = vpop.f32.mrb[10].mxu0 }
 0x3ce   :  { %v989_v33 = vmax.f32 %v984_v13, 0.0  ;;  %v1091_v10 = vpop.f32.mrb[11].mxu0 }
 0x3d0   :  { %990 = vst [vmem:[#allocation2] sm:$0x3] %v989_v33 }
 0x3d1   :  { %1146 = shalt.err (!%p1143_p4)
}
 0x3d2   :  { %s1147_s6 = scalar_lea.hbm %s1495_s7, 32 }
 0x3d3   :  { %p1148_p5 = scmp.ne.s32.totalorder %s1495_s7, %s1147_s6  ;;  %p1151_p6 = scmp.lt.u32.totalorder %s1147_s6, %s1495_s7 }
 0x3d5   :  { %p1153_p7 = pnand %p1151_p6, %p1148_p5 }
 0x3d7   :  { %1156 = shalt.err (!%p1153_p7)
}
 0x3d8   :  { %1000 = dma.vmem_to_hbm [thread:$0]  %s998_s26, 32, %s1495_s7, [#allocation3]  }
 0x3d9   :  { %1157 = dma.done.wait [#allocation3], 32  }
 0x3da   :  { %1158 = vsyncadd [#allocation3], 4294967264 }
 0x3db   :  { %1004 = vsyncpa [#allocation3], 1 }

</bundles_post_ra>
